<compile_context>
chip_gen: v6e
topology: v6e:2x2x1
jax: 0.10.0
libtpu: 0.0.40
codegen_flags: <defaults>
</compile_context>

<pallas_src>
import functools

import jax
import jax.numpy as jnp
from jax.experimental import pallas as pl
from jax.experimental.pallas import tpu as pltpu

ALPHA = 0.2  # LeakyReLU negative slope (module default used in the demo)


def _round_up(x, m):
    return (x + m - 1) // m * m


def _vmem_limit_bytes():
    """Per-generation scoped-VMEM limit: ~60% of physical (38M v7x, 76M v5e/v6e)."""
    try:
        cap = pltpu.get_tpu_info().vmem_capacity_bytes
    except Exception:  # pragma: no cover - conservative fallback
        cap = 64 * 1024 * 1024
    return max(16 * 1024 * 1024, min(int(cap * 0.6), 96 * 1024 * 1024))


# --------------------------- stage 1: projection ---------------------------
def _gat_project_kernel(h_ref, w_ref, a1_ref, a2_ref, whb_ref, wh1_ref, wh2_ref):
    # Wh tile = h_tile @ W  (f32 accumulation on the MXU).
    wh = jnp.dot(h_ref[...], w_ref[...], preferred_element_type=jnp.float32)
    # Wh1 = Wh @ a[:F] -> (TM, 1) column (broadcast-mul + lane reduction).
    wh1_ref[...] = jnp.sum(wh * a1_ref[...], axis=-1, keepdims=True)
    # Wh2 = Wh @ a[F:] emitted directly as a lane-dense (1, TM) row by
    # contracting the feature axis of both operands (no relayout afterwards).
    wh2_ref[...] = jnp.einsum("of,nf->on", a2_ref[...], wh,
                              preferred_element_type=jnp.float32)
    # bf16 copy of Wh for the MXU att @ Wh matmul in the attention kernel.
    whb_ref[...] = wh.astype(jnp.bfloat16)


# --------------------------- stage 2: attention ----------------------------
def _gat_attn_kernel(wh1_ref, wh2_ref, adj_ref, whb_ref, out_ref,
                     m_sc, l_sc, acc_sc, *, alpha, concat):
    k = pl.program_id(1)

    @pl.when(k == 0)
    def _():
        m_sc[...] = jnp.full(m_sc.shape, -jnp.inf, dtype=m_sc.dtype)
        l_sc[...] = jnp.zeros(l_sc.shape, dtype=l_sc.dtype)
        acc_sc[...] = jnp.zeros(acc_sc.shape, dtype=acc_sc.dtype)

    # e = LeakyReLU(Wh1 + Wh2^T) for this (TM, TN) tile.
    e = wh1_ref[...] + wh2_ref[...]          # (TM,1) + (1,TN) -> (TM,TN)
    e = jnp.maximum(e, alpha * e)            # LeakyReLU as a single vmax

    # Mask exactly like the PyTorch reference (-9e15 on non-edges).  This keeps
    # zero-degree rows finite (uniform softmax) instead of NaN, and avoids the
    # all-underflow corner case of a post-exp multiplicative mask.
    e = jnp.where(adj_ref[...] > 0, e, -9e15)

    # Online (flash-style) softmax over the key/column grid axis.
    m_prev = m_sc[...]
    m_new = jnp.maximum(m_prev, jnp.max(e, axis=1, keepdims=True))
    scale = jnp.exp(m_prev - m_new)
    p = jnp.exp(e - m_new)
    l_sc[...] = scale * l_sc[...] + jnp.sum(p, axis=1, keepdims=True)
    acc_sc[...] = scale * acc_sc[...] + jnp.dot(
        p.astype(jnp.bfloat16), whb_ref[...], preferred_element_type=jnp.float32)
    m_sc[...] = m_new

    # TODO(synk): training-mode dropout on the attention weights goes here.

    @pl.when(k == pl.num_programs(1) - 1)
    def _():
        # denom >= 1 by construction (masked fill keeps every row non-empty).
        h_prime = acc_sc[...] * pl.reciprocal(l_sc[...], approx=True)
        if concat:
            # ELU; padded feature columns are exactly 0 and ELU(0) == 0.
            h_prime = jnp.where(h_prime > 0, h_prime, jnp.exp(h_prime) - 1.0)
        out_ref[...] = h_prime.astype(out_ref.dtype)


# -------------------------------- wrapper -----------------------------------
def gat_forward(h, adj, W, a, *, alpha=ALPHA, concat=True, tm=256, tn=256,
                adj_buffers=None):
    """h: [N, F_in], adj: [N, N], W: [F_in, F_out], a: [2*F_out, 1]."""
    N, F_in = h.shape
    F_out = W.shape[1]
    F_pad = _round_up(F_out, 128)   # lane-dense width (no-op if already aligned)

    # ---- tile sizes / padded node count -------------------------------------
    N_pad = _round_up(N, 128)
    TM = min(tm, N_pad)
    TN = min(tn, N_pad)
    if N_pad % TM:
        TM = 128
    if N_pad % TN:
        TN = 128
    # Keep >= 2 row-grid steps so the adj stream can pipeline / megacore can
    # split (on v7x ideally cdiv(N, TM) >= 4 so each of the 2 TCs pipelines).
    while TM > 128 and (N_pad // TM) < 2:
        TM //= 2
    grid_m, grid_k = N_pad // TM, N_pad // TN
    vmem_limit = _vmem_limit_bytes()

    # ---- padded operands (padded rows/cols carry no edges -> masked out) ----
    h_p = jnp.zeros((N_pad, F_in), jnp.float32).at[:N, :].set(h.astype(jnp.float32))
    W_p = jnp.zeros((F_in, F_pad), jnp.float32).at[:, :F_out].set(W.astype(jnp.float32))
    a1 = jnp.zeros((1, F_pad), jnp.float32).at[:, :F_out].set(
        a[:F_out, 0].astype(jnp.float32)[None, :])
    a2 = jnp.zeros((1, F_pad), jnp.float32).at[:, :F_out].set(
        a[F_out:, 0].astype(jnp.float32)[None, :])
    # adj is only a binary mask: ship it as int8 (4x less HBM traffic / VMEM).
    adj_i8 = jnp.zeros((N_pad, N_pad), jnp.int8).at[:N, :N].set(
        (adj > 0).astype(jnp.int8))

    # ---- stage 1: row-tiled Wh, Wh@a1 (col), Wh@a2 (lane-dense row) ---------
    whb, wh1, wh2_row = pl.pallas_call(
        _gat_project_kernel,
        out_shape=(
            jax.ShapeDtypeStruct((N_pad, F_pad), jnp.bfloat16),
            jax.ShapeDtypeStruct((N_pad, 1), jnp.float32),
            jax.ShapeDtypeStruct((1, N_pad), jnp.float32),
        ),
        grid_spec=pltpu.PrefetchScalarGridSpec(
            num_scalar_prefetch=0,
            grid=(N_pad // TM,),
            in_specs=[
                pl.BlockSpec((TM, F_in), lambda i: (i, 0)),
                pl.BlockSpec((F_in, F_pad), lambda i: (0, 0),
                             pipeline_mode=pl.Buffered(1)),   # grid-invariant
                pl.BlockSpec((1, F_pad), lambda i: (0, 0),
                             pipeline_mode=pl.Buffered(1)),   # grid-invariant
                pl.BlockSpec((1, F_pad), lambda i: (0, 0),
                             pipeline_mode=pl.Buffered(1)),   # grid-invariant
            ],
            out_specs=(
                pl.BlockSpec((TM, F_pad), lambda i: (i, 0)),
                pl.BlockSpec((TM, 1), lambda i: (i, 0)),
                pl.BlockSpec((1, TM), lambda i: (0, i)),
            ),
        ),
        compiler_params=pltpu.CompilerParams(
            dimension_semantics=("parallel",),
            vmem_limit_bytes=vmem_limit,
        ),
    )(h_p, W_p, a1, a2)

    # ---- stage 2: (row x key)-tiled online-softmax attention + att @ Wh -----
    adj_kw = {}
    if adj_buffers is not None:   # e.g. 3 on v5e if the profile shows DMA waits
        adj_kw["pipeline_mode"] = pl.Buffered(adj_buffers)

    out_pad = pl.pallas_call(
        functools.partial(_gat_attn_kernel, alpha=float(alpha), concat=concat),
        out_shape=jax.ShapeDtypeStruct((N_pad, F_pad), jnp.float32),
        grid_spec=pltpu.PrefetchScalarGridSpec(
            num_scalar_prefetch=0,
            grid=(grid_m, grid_k),
            in_specs=[
                pl.BlockSpec((TM, 1), lambda i, k: (i, 0)),    # Wh1 column tile
                pl.BlockSpec((1, TN), lambda i, k: (0, k)),    # Wh2 row tile
                pl.BlockSpec((TM, TN), lambda i, k: (i, k), **adj_kw),  # adj int8
                pl.BlockSpec((TN, F_pad), lambda i, k: (k, 0)),  # Wh bf16 tile
            ],
            out_specs=pl.BlockSpec((TM, F_pad), lambda i, k: (i, 0)),
            scratch_shapes=[
                pltpu.VMEM((TM, 1), jnp.float32),     # running max
                pltpu.VMEM((TM, 1), jnp.float32),     # running denom
                pltpu.VMEM((TM, F_pad), jnp.float32),  # running numerator
            ],
        ),
        compiler_params=pltpu.CompilerParams(
            dimension_semantics=("parallel", "arbitrary"),  # reduction axis last
            vmem_limit_bytes=vmem_limit,
        ),
        cost_estimate=pl.CostEstimate(
            flops=2 * N_pad * N_pad * F_pad + 12 * N_pad * N_pad,
            transcendentals=N_pad * N_pad + N_pad * F_pad,
            bytes_accessed=(N_pad * N_pad                      # adj (int8)
                            + grid_m * N_pad * F_pad * 2       # Wh bf16 per row tile
                            + N_pad * F_pad * 4                # output
                            + N_pad * 8)),                     # Wh1 + Wh2
    )(wh1, wh2_row, adj_i8, whb)

    return out_pad[:N, :F_out]


def xavier_uniform(key, shape, gain):
    fan_in, fan_out = shape[0], shape[1]
    bound = gain * jnp.sqrt(6.0 / (fan_in + fan_out))
    return jax.random.uniform(key, shape, jnp.float32, -bound, bound)


if __name__ == "__main__":
    N = 256      # number of graph nodes
    F_IN = 16    # in_features
    F_OUT = 32   # out_features

    key = jax.random.PRNGKey(0)
    k_h, k_adj, k_w, k_a = jax.random.split(key, 4)

    h = jax.random.normal(k_h, (N, F_IN), jnp.float32)
    adj = (jax.random.uniform(k_adj, (N, N)) > 0.5).astype(jnp.float32)
    adj = jnp.maximum(adj, jnp.eye(N, dtype=jnp.float32))  # self-loops

    W = xavier_uniform(k_w, (F_IN, F_OUT), gain=1.414)
    a = xavier_uniform(k_a, (2 * F_OUT, 1), gain=1.414)

    out = gat_forward(h, adj, W, a, alpha=ALPHA, concat=True)
    jax.block_until_ready(out)

    # pure-JAX f32 reference (PyTorch semantics, eval mode)
    wh = h @ W
    e = wh @ a[:F_OUT] + (wh @ a[F_OUT:]).T
    e = jnp.where(e > 0, e, ALPHA * e)
    att = jax.nn.softmax(jnp.where(adj > 0, e, -9e15), axis=1)
    ref = jax.nn.elu(att @ wh)

    # bf16 MXU operands + approx reciprocal introduce ~1e-3 relative error.
    max_err = float(jnp.max(jnp.abs(out - ref)))
    assert out.shape == (N, F_OUT)
    assert jnp.allclose(out, ref, atol=2e-2, rtol=2e-2), (
        f"mismatch vs reference (max abs err {max_err})")

    print("KERNEL_OK")
</pallas_src>

<mosaic_0001>
module attributes {stable_mosaic.version = 11 : i64} {
  func.func @_gat_project_kernel(%arg0: i32, %arg1: memref<128x16xf32, #tpu.memory_space<vmem>>, %arg2: memref<16x128xf32, #tpu.memory_space<vmem>>, %arg3: memref<1x128xf32, #tpu.memory_space<vmem>>, %arg4: memref<1x128xf32, #tpu.memory_space<vmem>>, %arg5: memref<128x128xbf16, #tpu.memory_space<vmem>>, %arg6: memref<128x1xf32, #tpu.memory_space<vmem>>, %arg7: memref<1x128xf32, #tpu.memory_space<vmem>>) attributes {dimension_semantics = [#tpu.dimension_semantics<parallel>], iteration_bounds = array<i64: 2>, scalar_prefetch = 0 : i64, scratch_operands = 0 : i64, tpu.core_type = #tpu.core_type<tc>, window_params = [{transform_indices = @transform_0, window_bounds = array<i64: 128, 16>}, {pipeline_mode = #tpu.pipeline_mode<synchronous>, transform_indices = @transform_1, window_bounds = array<i64: 16, 128>}, {pipeline_mode = #tpu.pipeline_mode<synchronous>, transform_indices = @transform_2, window_bounds = array<i64: 1, 128>}, {pipeline_mode = #tpu.pipeline_mode<synchronous>, transform_indices = @transform_3, window_bounds = array<i64: 1, 128>}, {transform_indices = @transform_4, window_bounds = array<i64: 128, 128>}, {transform_indices = @transform_5, window_bounds = array<i64: 128, 1>}, {transform_indices = @transform_6, window_bounds = array<i64: 1, 128>}]} {
    %c0 = arith.constant 0 : index
    %c0_0 = arith.constant 0 : index
    %0 = vector.load %arg1[%c0, %c0_0] : memref<128x16xf32, #tpu.memory_space<vmem>>, vector<128x16xf32>
    %c0_1 = arith.constant 0 : index
    %c0_2 = arith.constant 0 : index
    %1 = vector.load %arg2[%c0_1, %c0_2] : memref<16x128xf32, #tpu.memory_space<vmem>>, vector<16x128xf32>
    %cst = arith.constant dense<0.000000e+00> : vector<128x128xf32>
    %2 = tpu.matmul %0, %1, %cst {dimension_numbers = #tpu.dot_dimension_numbers<[1], [0], [0], [1], [0, 0, 1, 1], [], []>} : vector<128x16xf32>, vector<16x128xf32>, vector<128x128xf32> -> vector<128x128xf32>
    %c0_3 = arith.constant 0 : index
    %c0_4 = arith.constant 0 : index
    %3 = vector.load %arg3[%c0_3, %c0_4] : memref<1x128xf32, #tpu.memory_space<vmem>>, vector<1x128xf32>
    %4 = vector.broadcast %3 : vector<1x128xf32> to vector<128x128xf32>
    %5 = arith.mulf %2, %4 : vector<128x128xf32>
    %cst_5 = arith.constant dense<0.000000e+00> : vector<128xf32>
    %6 = vector.multi_reduction <add>, %5, %cst_5 [1] : vector<128x128xf32> to vector<128xf32>
    %7 = vector.shape_cast %6 : vector<128xf32> to vector<128x1xf32>
    %c0_6 = arith.constant 0 : index
    %c0_7 = arith.constant 0 : index
    %8 = vector.load %arg6[%c0_6, %c0_7] : memref<128x1xf32, #tpu.memory_space<vmem>>, vector<128x1xf32>
    tpu.vector_store %arg6[%c0_6, %c0_7], %7 {strides = array<i32>} : memref<128x1xf32, #tpu.memory_space<vmem>>, vector<128x1xf32>,
    %c0_8 = arith.constant 0 : index
    %c0_9 = arith.constant 0 : index
    %9 = vector.load %arg4[%c0_8, %c0_9] : memref<1x128xf32, #tpu.memory_space<vmem>>, vector<1x128xf32>
    "tpu.trace_start"() <{level = 10 : i32, message = "of,nf->on"}> : () -> ()
    %cst_10 = arith.constant dense<0.000000e+00> : vector<1x128xf32>
    %10 = tpu.matmul %9, %2, %cst_10 {dimension_numbers = #tpu.dot_dimension_numbers<[1], [1], [0], [0], [0, 0, 1, 0], [], []>} : vector<1x128xf32>, vector<128x128xf32>, vector<1x128xf32> -> vector<1x128xf32>
    "tpu.trace_stop"() : () -> ()
    %c0_11 = arith.constant 0 : index
    %c0_12 = arith.constant 0 : index
    %11 = vector.load %arg7[%c0_11, %c0_12] : memref<1x128xf32, #tpu.memory_space<vmem>>, vector<1x128xf32>
    tpu.vector_store %arg7[%c0_11, %c0_12], %10 {strides = array<i32>} : memref<1x128xf32, #tpu.memory_space<vmem>>, vector<1x128xf32>,
    %12 = arith.truncf %2 : vector<128x128xf32> to vector<128x128xbf16>
    %c0_13 = arith.constant 0 : index
    %c0_14 = arith.constant 0 : index
    %13 = vector.load %arg5[%c0_13, %c0_14] : memref<128x128xbf16, #tpu.memory_space<vmem>>, vector<128x128xbf16>
    tpu.vector_store %arg5[%c0_13, %c0_14], %12 {strides = array<i32>} : memref<128x128xbf16, #tpu.memory_space<vmem>>, vector<128x128xbf16>,
    return
  }
  func.func @transform_0(%arg0: i32) -> (i32, i32) {
    %c0_i32 = arith.constant 0 : i32
    %c0_i32_0 = arith.constant 0 : i32
    return %arg0, %c0_i32 : i32, i32
  }
  func.func @transform_1(%arg0: i32) -> (i32, i32) {
    %c0_i32 = arith.constant 0 : i32
    %c0_i32_0 = arith.constant 0 : i32
    %c0_i32_1 = arith.constant 0 : i32
    return %c0_i32, %c0_i32_0 : i32, i32
  }
  func.func @transform_2(%arg0: i32) -> (i32, i32) {
    %c0_i32 = arith.constant 0 : i32
    %c0_i32_0 = arith.constant 0 : i32
    %c0_i32_1 = arith.constant 0 : i32
    return %c0_i32, %c0_i32_0 : i32, i32
  }
  func.func @transform_3(%arg0: i32) -> (i32, i32) {
    %c0_i32 = arith.constant 0 : i32
    %c0_i32_0 = arith.constant 0 : i32
    %c0_i32_1 = arith.constant 0 : i32
    return %c0_i32, %c0_i32_0 : i32, i32
  }
  func.func @transform_4(%arg0: i32) -> (i32, i32) {
    %c0_i32 = arith.constant 0 : i32
    %c0_i32_0 = arith.constant 0 : i32
    return %arg0, %c0_i32 : i32, i32
  }
  func.func @transform_5(%arg0: i32) -> (i32, i32) {
    %c0_i32 = arith.constant 0 : i32
    %c0_i32_0 = arith.constant 0 : i32
    return %arg0, %c0_i32 : i32, i32
  }
  func.func @transform_6(%arg0: i32) -> (i32, i32) {
    %c0_i32 = arith.constant 0 : i32
    %c0_i32_0 = arith.constant 0 : i32
    return %c0_i32, %arg0 : i32, i32
  }
}

</mosaic_0001>

<bundles_post_ra>
// kernel: tpu_custom_call.1
= control target key start
LH: loop header
LB: loop body
LE: loop exit
PB: predicated region body
PF: predicated region fallthrough
CT: control target
= control target key end

     0   :  { %12 = vsyncpa [#allocation3], 0  ;;  %s1562_s0 = inlined_call_operand.vmem [shape: f32[256,16], index: 0, kind: input, shape index: {}]   ;;  %s1563_s1 = inlined_call_operand.vmem [shape: f32[16,128], index: 1, kind: input, shape index: {}]   ;;  %s1564_s2 = inlined_call_operand.vmem [shape: f32[1,128], index: 2, kind: input, shape index: {}]   ;;  %s1565_s3 = inlined_call_operand.vmem [shape: f32[1,128], index: 3, kind: input, shape index: {}]   ;;  %s1566_s4 = inlined_call_operand.hbm [shape: bf16[256,128], index: 4, kind: output, shape index: {0}]   ;;  %s1567_s5 = inlined_call_operand.vmem [shape: f32[256,1], index: 5, kind: output, shape index: {1}]   ;;  %s1568_s6 = inlined_call_operand.hbm [shape: f32[1,256], index: 6, kind: output, shape index: {2}]  }
   0x1   :  { %14 = vsyncpa [#allocation3 + $0x1], 0 }
   0x2   :  { %15 = vsyncpa [#allocation5], 0 }
   0x3   :  { %17 = vsyncpa [#allocation5 + $0x1], 0  ;;  %s1258_s21 = smov 0   ;;  %s1260_s22 = smov 0  }
   0x4   :  { %s1262_s23 = smov 0   ;;  %s1264_s24 = smov 0  }
   0x5 LB: > { %s1279_s25 = sadd.s32 4294967295, %s1215_s24   ;;  %s867_s26 = sadd.s32 4294967294, %s1215_s24   ;;  %s1215_s24 = sphi %s1264_s24, %s1574_s24   ;;  %s1211_s23 = sphi %s1262_s23, %s1573_s23   ;;  %s1207_s22 = sphi %s1260_s22, %s1572_s22   ;;  %s1203_s21 = sphi %s1258_s21, %s1571_s21  }
   0x6   : > { %s1283_s27 = sadd.s32 1, %s1215_s24   ;;  %s119_s28 = sadd.s32 1, %s1211_s23 }
   0x7   : > { %s116_s29 = ssub.s32 %s1215_s24, %s1283_s27  ;;  %p129_p0 = scmp.ne.s32.totalorder %s1211_s23, %s1207_s22 }
   0x8   : > { %p117_p1 = scmp.eq.s32.totalorder %s116_s29, 0  ;;  %p130_p2 = scmp.eq.s32.totalorder %s1279_s25, 1 }
   0x9   : > { %p135_p3 = scmp.ne.s32.totalorder %s1207_s22, %s1203_s21  ;;  %p136_p4 = scmp.eq.s32.totalorder %s867_s26, 1 }
   0xa   : > { %s1294_s30 = scalar_select %p117_p1, %s1211_s23, %s119_s28  }
   0xb   : > { %p1296_p5 = por %p130_p2, %p129_p0  ;;  %p1300_p6 = por %p136_p4, %p135_p3 }
   0xc   : > { %p870_p7 = scmp.ge.s32.totalorder %s1215_s24, 1  ;;  %p224_p8 = scmp.lt.s32.totalorder %s1215_s24, 3 }
   0xe   : > { %p225_p9 = pnand %p870_p7, %p224_p8 }
   0xf   : > { %s1313_s13 = sshll.u32 (!%p225_p9), %s1279_s25, 4  ;;  %s1362_s19 = sand.u32 (!%p225_p9), 1, %s1207_s22  }
  0x10   : > { %228 = sbr.rel (%p225_p9) target bundleno = 518 (0x206), region = 36  ;;  %p264_p10 = scmp.lt.s32.totalorder (!%p225_p9), %s1313_s13, 31 }
  0x11   : > { %s871_s28 = sshll.u32 (!%p225_p9), %s1362_s19, 6  ;;  %s713_s26 = scalar_lea.sflag (!%p225_p9), [#allocation3], %s1362_s19 }
  0x12   : > { %s1380_s29 = scalar_lea.vmem (!%p225_p9), [#allocation2], %s871_s28 }
  0x13   : > { %s735_s20 = sshll.u32 (!%p225_p9), %s1380_s29, 4  ;;  %s1476_s20 = int_to_ptr.vmem [resolvable:$true] %s735_s20 }
  0x14   : > { %s1125_s28 = scalar_lea.vmem (!%p225_p9), %s1476_s20, 1024 }
  0x15   : > { %v293_v0 = vld [vmem:[%s1563_s1 + $0x8] sm:$0xff]  ;;  %v292_v1 = vld [vmem:[%s1563_s1] sm:$0xff]  ;;  %s1317_s14 = scalar_select %p264_p10, %s1313_s13, 31  ;;  %vm294_vm0 = vcmask 130048   ;;  %v1217_v18 = vmov 0.0   ;;  %vm1218_vm1 = vmmov 0  }
  0x16   : > { %1014 = vmatprep.subr.mxu0 %v293_v0  ;;  %1042 = vmatprep.subr.mxu1 %v1217_v18  ;;  %v1367_v19 = vld [vmem:[%s1564_s2] ss:$0 sm:$0xff]  ;;  %vm543_vm2 = vcmask 7168   ;;  %p1126_p11 = scmp.ne.s32.totalorder %s1476_s20, %s1125_s28 }
  0x17   : > { %1015 = vmatpush3.msra.mxu0 %v293_v0  ;;  %s873_s15 = sshll.u32 %s1317_s14, 3  ;;  %1074 = vmatprep.mubr.msk.f32.mxu1 %vm1218_vm1, %v1217_v18  ;;  %v560_v60 = vld [vmem:[%s1565_s3] sm:$0x1]  ;;  %s931_s14 = sshll.u32 %s1279_s25, 10 }
  0x18   : > { %1016 = vmatprep.subr.mxu0 %v292_v1  ;;  %s1325_s18 = scalar_lea.vmem %s1562_s0, %s873_s15  ;;  %s1449_s16 = scalar_lea.vmem %s1567_s5, %s873_s15 }
  0x19   : > { %1017 = vmatpush3.msra.mxu0 %v292_v1  ;;  %v276_v2 = vld [vmem:[%s1325_s18] sm:$0xff]  ;;  %v277_v3 = vld [vmem:[%s1325_s18 + $0x8] sm:$0xff]  ;;  %v278_v4 = vld [vmem:[%s1325_s18 + $0x10] sm:$0xff]  ;;  %p1127_p12 = pnand %p1126_p11, %p1296_p5  ;;  %s1219_s25 = smov [#allocation2]  }
  0x1a   : > { %1018 = vmatprep.mubr.msk.f32.mxu0 %vm294_vm0, %v276_v2  ;;  %v279_v5 = vld [vmem:[%s1325_s18 + $0x18] sm:$0xff]  ;;  %v280_v6 = vld [vmem:[%s1325_s18 + $0x20] sm:$0xff]  ;;  %v281_v7 = vld [vmem:[%s1325_s18 + $0x28] sm:$0xff]  ;;  %s1129_s9 = sshll.u32 %s1219_s25, 4  ;;  %s1130_s9 = int_to_ptr.vmem [resolvable:$false] %s1129_s9 }
  0x1b   : > { %1019 = vmatmul.mubr.msk.f32.vlgmr.msra.gmra.mxu0 %vm294_vm0, %v277_v3  ;;  %v282_v8 = vld [vmem:[%s1325_s18 + $0x30] sm:$0xff]  ;;  %v283_v9 = vld [vmem:[%s1325_s18 + $0x38] sm:$0xff]  ;;  %v284_v10 = vld [vmem:[%s1325_s18 + $0x40] sm:$0xff]  ;;  %p1128_p13 = pneg %p1127_p12  ;;  %s1131_s10 = scalar_lea.vmem %s1130_s9, 2048 }
  0x1c   : > { %1021 = vmatprep.mubr.msk.f32.mxu0 %vm294_vm0, %v278_v4  ;;  %v285_v11 = vld [vmem:[%s1325_s18 + $0x48] sm:$0xff]  ;;  %v286_v12 = vld [vmem:[%s1325_s18 + $0x50] sm:$0xff]  ;;  %v287_v13 = vld [vmem:[%s1325_s18 + $0x58] sm:$0xff]  ;;  %p1132_p0 = scmp.lt.s32.totalorder %s1476_s20, %s1130_s9  ;;  %p1133_p1 = scmp.lt.s32.totalorder %s1131_s10, %s1125_s28 }
  0x1d   : > { %v288_v14 = vld [vmem:[%s1325_s18 + $0x60] sm:$0xff]  ;;  %v289_v15 = vld [vmem:[%s1325_s18 + $0x68] sm:$0xff]  ;;  %v290_v16 = vld [vmem:[%s1325_s18 + $0x70] sm:$0xff] }
  0x1e   : > { %v291_v17 = vld [vmem:[%s1325_s18 + $0x78] sm:$0xff]  ;;  %s1471_s18 = scalar_lea.hbm %s1566_s4, %s931_s14  ;;  %p1134_p2 = por %p1133_p1, %p1132_p0 }
  0x1f   : > { %1022 = vmatmul.mubr.msk.f32.gmra.mxu0 %vm294_vm0, %v279_v5 }
  0x20   : > { %1024 = vmatprep.mubr.msk.f32.mxu0 %vm294_vm0, %v280_v6  ;;  %p1135_p3 = pnand %p1134_p2, %p1128_p13 }
  0x23   : > { %1025 = vmatmul.mubr.msk.f32.gmra.mxu0 %vm294_vm0, %v281_v7 }
  0x24   : > { %1027 = vmatprep.mubr.msk.f32.mxu0 %vm294_vm0, %v282_v8 }
  0x27   : > { %1028 = vmatmul.mubr.msk.f32.gmra.mxu0 %vm294_vm0, %v283_v9 }
  0x28   : > { %1030 = vmatprep.mubr.msk.f32.mxu0 %vm294_vm0, %v284_v10 }
  0x2b   : > { %1031 = vmatmul.mubr.msk.f32.gmra.mxu0 %vm294_vm0, %v285_v11 }
  0x2c   : > { %1033 = vmatprep.mubr.msk.f32.mxu0 %vm294_vm0, %v286_v12 }
  0x2f   : > { %1034 = vmatmul.mubr.msk.f32.gmra.mxu0 %vm294_vm0, %v287_v13 }
  0x30   : > { %1036 = vmatprep.mubr.msk.f32.mxu0 %vm294_vm0, %v288_v14 }
  0x33   : > { %1037 = vmatmul.mubr.msk.f32.gmra.mxu0 %vm294_vm0, %v289_v15 }
  0x34   : > { %1039 = vmatprep.mubr.msk.f32.mxu0 %vm294_vm0, %v290_v16 }
  0x37   : > { %1040 = vmatmul.mubr.msk.f32.gmra.mxu0 %vm294_vm0, %v291_v17 }
  0xdb   : > { %v1370_v20 = vpop.f32.mrf.mxu0 }
  0xdc   : > { %v496_v21 = vmul.f32 %v1370_v20, %v1367_v19 }
  0xdd   : > { %v1374_v22 = vpop.f32.mrf.mxu0 }
  0xde   : > { %v935_v23 = vpack.c.bf16 %v1370_v20, %v1374_v22  ;;  %513 = vadd.xlane.f32.xlu0 %v496_v21  ;;  %v495_v25 = vmul.f32 %v1367_v19, %v1374_v22 }
  0xdf   : > { %v1378_v24 = vpop.f32.mrf.mxu0 }
  0xe0   : > { %936 = vst [vmem:[%s1380_s29] sm:$0xff] %v935_v23   ;;  %v498_v26 = vmul.f32 %v1378_v24, %v1367_v19 }
  0xe1   : > { %v1387_v27 = vpop.f32.mrf.mxu0 }
  0xe2   : > { %v940_v28 = vpack.c.bf16 %v1378_v24, %v1387_v27  ;;  %511 = vadd.xlane.f32.xlu0 %v495_v25  ;;  %517 = vadd.xlane.f32.xlu1 %v498_v26  ;;  %v497_v30 = vmul.f32 %v1367_v19, %v1387_v27 }
  0xe3   : > { %v1391_v29 = vpop.f32.mrf.mxu0 }
  0xe4   : > { %972 = vst [vmem:[%s1380_s29 + $0x8] sm:$0xff] %v940_v28   ;;  %v500_v35 = vmul.f32 %v1391_v29, %v1367_v19 }
  0xe5   : > { %v1396_v31 = vpop.f32.mrf.mxu0 }
  0xe6   : > { %v945_v32 = vpack.c.bf16 %v1391_v29, %v1396_v31  ;;  %515 = vadd.xlane.f32.xlu1 %v497_v30  ;;  %v499_v33 = vmul.f32 %v1367_v19, %v1396_v31 }
  0xe7   : > { %v1029_v34 = vpop.f32.mrf.mxu0 }
  0xe8   : > { %973 = vst [vmem:[%s1380_s29 + $0x10] sm:$0xff] %v945_v32   ;;  %519 = vadd.xlane.f32.xlu0 %v499_v33  ;;  %v502_v40 = vmul.f32 %v1029_v34, %v1367_v19 }
  0xe9   : > { %v439_v36 = vpop.f32.mrf.mxu0 }
  0xea   : > { %v950_v37 = vpack.c.bf16 %v1029_v34, %v439_v36  ;;  %521 = vadd.xlane.f32.xlu1 %v500_v35  ;;  %v501_v38 = vmul.f32 %v1367_v19, %v439_v36 }
  0xeb   : > { %v1032_v39 = vpop.f32.mrf.mxu0 }
  0xec   : > { %974 = vst [vmem:[%s1380_s29 + $0x18] sm:$0xff] %v950_v37   ;;  %523 = vadd.xlane.f32.xlu0 %v501_v38  ;;  %v504_v45 = vmul.f32 %v1032_v39, %v1367_v19 }
  0xed   : > { %v449_v41 = vpop.f32.mrf.mxu0 }
  0xee   : > { %v955_v42 = vpack.c.bf16 %v1032_v39, %v449_v41  ;;  %525 = vadd.xlane.f32.xlu1 %v502_v40  ;;  %v503_v43 = vmul.f32 %v1367_v19, %v449_v41 }
  0xef   : > { %v1035_v44 = vpop.f32.mrf.mxu0 }
  0xf0   : > { %975 = vst [vmem:[%s1380_s29 + $0x20] sm:$0xff] %v955_v42   ;;  %527 = vadd.xlane.f32.xlu0 %v503_v43  ;;  %v506_v50 = vmul.f32 %v1035_v44, %v1367_v19 }
  0xf1   : > { %v459_v46 = vpop.f32.mrf.mxu0 }
  0xf2   : > { %v960_v47 = vpack.c.bf16 %v1035_v44, %v459_v46  ;;  %529 = vadd.xlane.f32.xlu1 %v504_v45  ;;  %v505_v48 = vmul.f32 %v1367_v19, %v459_v46 }
  0xf3   : > { %v1038_v49 = vpop.f32.mrf.mxu0 }
  0xf4   : > { %976 = vst [vmem:[%s1380_s29 + $0x28] sm:$0xff] %v960_v47   ;;  %531 = vadd.xlane.f32.xlu0 %v505_v48  ;;  %v508_v55 = vmul.f32 %v1038_v49, %v1367_v19 }
  0xf5   : > { %v469_v51 = vpop.f32.mrf.mxu0 }
  0xf6   : > { %v965_v52 = vpack.c.bf16 %v1038_v49, %v469_v51  ;;  %533 = vadd.xlane.f32.xlu1 %v506_v50  ;;  %v507_v53 = vmul.f32 %v1367_v19, %v469_v51 }
  0xf7   : > { %v1041_v54 = vpop.f32.mrf.mxu0 }
  0xf8   : > { %977 = vst [vmem:[%s1380_s29 + $0x30] sm:$0xff] %v965_v52   ;;  %535 = vadd.xlane.f32.xlu0 %v507_v53  ;;  %1043 = vmatpush3.xpose.msra.mxu1 %v1041_v54  ;;  %v510_v59 = vmul.f32 %v1041_v54, %v1367_v19 }
  0xf9   : > { %v479_v56 = vpop.f32.mrf.mxu0  ;;  %1044 = vmatprep.subr.mxu1 %v1217_v18 }
  0xfa   : > { %v970_v57 = vpack.c.bf16 %v1041_v54, %v479_v56  ;;  %537 = vadd.xlane.f32.xlu1 %v508_v55  ;;  %v509_v58 = vmul.f32 %v1367_v19, %v479_v56 }
  0xfc   : > { %978 = vst [vmem:[%s1380_s29 + $0x38] sm:$0xff] %v970_v57   ;;  %1045 = vmatpush3.xpose.msra.mxu1 %v479_v56  ;;  %539 = vadd.xlane.f32.xlu0 %v509_v58 }
  0xfd   : > { %1046 = vmatprep.subr.mxu1 %v1217_v18 }
  0xfe   : > { %541 = vadd.xlane.f32.xlu1 %v510_v59 }
 0x100   : > { %1047 = vmatpush3.xpose.msra.mxu1 %v1038_v49 }
 0x101   : > { %1048 = vmatprep.subr.mxu1 %v1217_v18 }
 0x104   : > { %1049 = vmatpush3.xpose.msra.mxu1 %v469_v51 }
 0x105   : > { %1050 = vmatprep.subr.mxu1 %v1217_v18 }
 0x108   : > { %1051 = vmatpush3.xpose.msra.mxu1 %v1035_v44 }
 0x109   : > { %1052 = vmatprep.subr.mxu1 %v1217_v18 }
 0x10c   : > { %1053 = vmatpush3.xpose.msra.mxu1 %v459_v46 }
 0x10d   : > { %1054 = vmatprep.subr.mxu1 %v1217_v18 }
 0x110   : > { %1055 = vmatpush3.xpose.msra.mxu1 %v1032_v39 }
 0x111   : > { %1056 = vmatprep.subr.mxu1 %v1217_v18 }
 0x114   : > { %1057 = vmatpush3.xpose.msra.mxu1 %v449_v41 }
 0x115   : > { %1058 = vmatprep.subr.mxu1 %v1217_v18 }
 0x118   : > { %1059 = vmatpush3.xpose.msra.mxu1 %v1029_v34 }
 0x119   : > { %1060 = vmatprep.subr.mxu1 %v1217_v18 }
 0x11c   : > { %1061 = vmatpush3.xpose.msra.mxu1 %v439_v36 }
 0x11d   : > { %1062 = vmatprep.subr.mxu1 %v1217_v18 }
 0x120   : > { %1063 = vmatpush3.xpose.msra.mxu1 %v1391_v29 }
 0x121   : > { %1064 = vmatprep.subr.mxu1 %v1217_v18 }
 0x124   : > { %1065 = vmatpush3.xpose.msra.mxu1 %v1396_v31 }
 0x125   : > { %1066 = vmatprep.subr.mxu1 %v1217_v18 }
 0x128   : > { %1067 = vmatpush3.xpose.msra.mxu1 %v1378_v24 }
 0x129   : > { %1068 = vmatprep.subr.mxu1 %v1217_v18 }
 0x12c   : > { %1069 = vmatpush3.xpose.msra.mxu1 %v1387_v27 }
 0x12d   : > { %1070 = vmatprep.subr.mxu1 %v1217_v18 }
 0x130   : > { %1071 = vmatpush3.xpose.msra.mxu1 %v1370_v20 }
 0x131   : > { %1072 = vmatprep.subr.mxu1 %v1217_v18 }
 0x134   : > { %1073 = vmatpush3.xpose.msra.mxu1 %v1374_v22 }
 0x137   : > { %1075 = vmatmul.mubr.f32.vlgmr.msra.gmra.mxu1 %v560_v60 }
 0x167   : > { %v514_v61 = vpop.xlane.xlu0 %513 }
 0x168   : > { %545 = vst.msk [vmem:[%s1449_s16 + $0x8] sm:$0xff] %vm543_vm2, %v514_v61 }
 0x16b   : > { %v512_v62 = vpop.xlane.xlu0 %511  ;;  %v518_v63 = vpop.xlane.xlu1 %517 }
 0x16c   : > { %544 = vst.msk [vmem:[%s1449_s16] sm:$0xff] %vm543_vm2, %v512_v62  ;;  %547 = vst.msk [vmem:[%s1449_s16 + $0x18] sm:$0xff] %vm543_vm2, %v518_v63 }
 0x16f   : > { %v516_v0 = vpop.xlane.xlu1 %515 }
 0x170   : > { %546 = vst.msk [vmem:[%s1449_s16 + $0x10] sm:$0xff] %vm543_vm2, %v516_v0 }
 0x171   : > { %v520_v1 = vpop.xlane.xlu0 %519 }
 0x172   : > { %548 = vst.msk [vmem:[%s1449_s16 + $0x20] sm:$0xff] %vm543_vm2, %v520_v1 }
 0x173   : > { %v522_v2 = vpop.xlane.xlu1 %521 }
 0x174   : > { %549 = vst.msk [vmem:[%s1449_s16 + $0x28] sm:$0xff] %vm543_vm2, %v522_v2 }
 0x175   : > { %v524_v3 = vpop.xlane.xlu0 %523 }
 0x176   : > { %550 = vst.msk [vmem:[%s1449_s16 + $0x30] sm:$0xff] %vm543_vm2, %v524_v3 }
 0x177   : > { %v526_v4 = vpop.xlane.xlu1 %525 }
 0x178   : > { %551 = vst.msk [vmem:[%s1449_s16 + $0x38] sm:$0xff] %vm543_vm2, %v526_v4 }
 0x179   : > { %v528_v5 = vpop.xlane.xlu0 %527 }
 0x17a   : > { %552 = vst.msk [vmem:[%s1449_s16 + $0x40] sm:$0xff] %vm543_vm2, %v528_v5 }
 0x17b   : > { %v530_v6 = vpop.xlane.xlu1 %529 }
 0x17c   : > { %1138 = shalt.err (!%p1135_p3)
}
 0x17d   : > { %s1139_s29 = scalar_lea.hbm %s1471_s18, 1024  ;;  %s1143_s14 = scalar_lea.hbm %s1566_s4, 2048 }
 0x17e   : > { %p1140_p4 = scmp.ne.s32.totalorder %s1471_s18, %s1139_s29  ;;  %p1144_p9 = scmp.lt.s32.totalorder %s1471_s18, %s1566_s4 }
 0x17f   : > { %p1145_p10 = scmp.lt.s32.totalorder %s1143_s14, %s1139_s29 }
 0x180   : > { %p1141_p7 = pnand %p1140_p4, %p1296_p5 }
 0x181   : > { %p1146_p11 = por %p1145_p10, %p1144_p9 }
 0x182   : > { %p1142_p8 = pneg %p1141_p7 }
 0x184   : > { %p1147_p12 = pnand %p1146_p11, %p1142_p8 }
 0x186   : > { %1150 = shalt.err (!%p1147_p12)
}
 0x187   : > { %s1220_s28 = smov 64   ;;  %s1221_s25 = smov 4   ;;  %553 = vst.msk [vmem:[%s1449_s16 + $0x48] sm:$0xff] %vm543_vm2, %v530_v6  ;;  %v532_v7 = vpop.xlane.xlu0 %531  ;;  %v534_v8 = vpop.xlane.xlu1 %533 }
 0x188   : > { %1077 = dma.vmem_to_hbm [thread:$0]  (%p1296_p5), %s1476_s20, 1024, %s1471_s18, %s713_s26, %s1220_s28, %s1220_s28, %s1221_s25  }
 0x189   : > { %554 = vst.msk [vmem:[%s1449_s16 + $0x50] sm:$0xff] %vm543_vm2, %v532_v7  ;;  %555 = vst.msk [vmem:[%s1449_s16 + $0x58] sm:$0xff] %vm543_vm2, %v534_v8  ;;  %s262_s18 = scalar_lea.vmem [#allocation4], %s1362_s19  ;;  %s1522_s10 = scalar_lea.hbm %s1568_s6, %s1313_s13 }
 0x18a   : > { %s755_s20 = sshll.u32 %s262_s18, 4  ;;  %s723_s29 = scalar_lea.sflag [#allocation5], %s1362_s19  ;;  %s1516_s20 = int_to_ptr.vmem [resolvable:$true] %s755_s20 }
 0x18b   : > { %v536_v9 = vpop.xlane.xlu0 %535  ;;  %v538_v10 = vpop.xlane.xlu1 %537  ;;  %s1151_s11 = scalar_lea.vmem %s1516_s20, 16 }
 0x18c   : > { %556 = vst.msk [vmem:[%s1449_s16 + $0x60] sm:$0xff] %vm543_vm2, %v536_v9  ;;  %557 = vst.msk [vmem:[%s1449_s16 + $0x68] sm:$0xff] %vm543_vm2, %v538_v10  ;;  %p1152_p13 = scmp.ne.s32.totalorder %s1516_s20, %s1151_s11 }
 0x18e   : > { %p1153_p0 = pnand %p1152_p13, %p1296_p5 }
 0x18f   : > { %v540_v11 = vpop.xlane.xlu0 %539  ;;  %v542_v12 = vpop.xlane.xlu1 %541 }
 0x190   : > { %558 = vst.msk [vmem:[%s1449_s16 + $0x70] sm:$0xff] %vm543_vm2, %v540_v11  ;;  %559 = vst.msk [vmem:[%s1449_s16 + $0x78] sm:$0xff] %vm543_vm2, %v542_v12  ;;  %p1154_p1 = pneg %p1153_p0  ;;  %s1222_s16 = smov [#allocation4]  }
 0x191   : > { %s1155_s12 = sshll.u32 %s1222_s16, 4  ;;  %s1156_s12 = int_to_ptr.vmem [resolvable:$false] %s1155_s12 }
 0x192   : > { %s1157_s14 = scalar_lea.vmem %s1156_s12, 32  ;;  %p1158_p2 = scmp.lt.s32.totalorder %s1516_s20, %s1156_s12 }
 0x193   : > { %p1159_p3 = scmp.lt.s32.totalorder %s1157_s14, %s1151_s11 }
 0x195   : > { %p1160_p4 = por %p1159_p3, %p1158_p2 }
 0x197   : > { %p1161_p7 = pnand %p1160_p4, %p1154_p1 }
 0x1f7   : > { %v627_v13 = vpop.f32.mrf.mxu1 }
 0x1f8   : > { %631 = vst [vmem:[%s262_s18] sm:$0x1] %v627_v13 }
 0x1f9   : > { %v1076_v14 = vpop.f32.mrf.mxu1 }
 0x1fa   : > { %1164 = shalt.err (!%p1161_p7)
}
 0x1fb   : > { %s1165_s13 = scalar_lea.hbm %s1522_s10, 16  ;;  %s1169_s17 = scalar_lea.hbm %s1568_s6, 32 }
 0x1fc   : > { %p1166_p8 = scmp.ne.s32.totalorder %s1522_s10, %s1165_s13  ;;  %p1170_p11 = scmp.lt.s32.totalorder %s1522_s10, %s1568_s6 }
 0x1fd   : > { %p1171_p12 = scmp.lt.s32.totalorder %s1169_s17, %s1165_s13 }
 0x1fe   : > { %p1167_p9 = pnand %p1166_p8, %p1296_p5 }
 0x1ff   : > { %p1172_p13 = por %p1171_p12, %p1170_p11 }
 0x200   : > { %p1168_p10 = pneg %p1167_p9 }
 0x202   : > { %p1173_p0 = pnand %p1172_p13, %p1168_p10 }
 0x204   : > { %1176 = shalt.err (!%p1173_p0)
}
 0x205   : > { %1078 = dma.vmem_to_hbm [thread:$0]  (%p1296_p5), %s1516_s20, 16, %s1522_s10, %s723_s29  }
 0x206 PF: > { %p1088_p1 = scmp.ge.s32.totalorder %s1215_s24, 2  ;;  %s767_s18 = sand.u32 1, %s1203_s21  }
 0x207   : > { %s768_s26 = scalar_lea.sflag [#allocation3], %s767_s18 }
 0x208   : > { %p1082_p2 = pnand %p1088_p1, %p1300_p6 }
 0x20a   : > { %p1083_p3 = pneg %p1082_p2 }
 0x20c   : > { %1194 = dma.done.wait (%p1083_p3), %s768_s26, 1024  }
 0x20d   : > { %1196 = vsyncadd (%p1083_p3), %s768_s26, 4294966272  ;;  %s785_s9 = scalar_lea.sflag [#allocation5], %s767_s18 }
 0x20e   : > { %1198 = dma.done.wait (%p1083_p3), %s785_s9, 16  }
 0x20f   : > { %1200 = vsyncadd (%p1083_p3), %s785_s9, 4294967280  ;;  %p20_p5 = scmp.ge.s32.totalorder %s1283_s27, 4   ;;  %s1571_s21 = smov %s1207_s22 }
 0x210   : > { %s1572_s22 = smov %s1211_s23  ;;  %s1573_s23 = smov %s1294_s30 }
 0x211   : > { %s1574_s24 = smov %s1283_s27  ;;  %22 = sbr.rel (!%p20_p5) target bundleno = 5 (0x5), region = 100 }
 0x216   :  { %789 = vsyncpa [#allocation3], 1 }
 0x217   :  { %791 = vsyncpa [#allocation3 + $0x1], 1 }
 0x218   :  { %792 = vsyncpa [#allocation5], 1 }
 0x219   :  { %794 = vsyncpa [#allocation5 + $0x1], 1 }

</bundles_post_ra>
